<compile_context>
chip_gen: v7x
topology: tpu7x:2x2x1
jax: 0.10.0
libtpu: 0.0.40
codegen_flags: <defaults>
</compile_context>

<pallas_src>
import math

import jax
import jax.numpy as jnp
from jax import lax
from jax.experimental import pallas as pl
from jax.experimental.pallas import tpu as pltpu


def _pick_q_tile(q, target=512):
    """Largest Q tile <= target that divides Q and is sublane-friendly."""
    if q <= target:
        return q
    for t in range(target, 7, -1):
        if q % t == 0 and t % 8 == 0:
            return t
    return q


def _pick_batch_tile(b, per_elem_bytes, budget_bytes):
    """Largest batch tile that divides B and fits the VMEM budget."""
    for cand in range(b, 0, -1):
        if b % cand == 0 and cand * per_elem_bytes <= budget_bytes:
            return cand
    return 1


def dot_product_attention(queries, keys, values, valid_lens=None,
                          return_weights=True):
    """Pallas TPU scaled dot-product attention.

    queries: (B, Q, D), keys: (B, K, D), values: (B, K, V)
    valid_lens: None, int (B,) per-batch, or int (B, Q) per-query valid lengths.
    Returns output (B, Q, V) and, if return_weights, attention weights (B, Q, K).
    """
    B, Q, D = queries.shape
    Bk, K, Dk = keys.shape
    Bv, Kv, V = values.shape
    assert (Bk, Bv, Dk, Kv) == (B, B, D, K)

    use_mask = valid_lens is not None
    scale = 1.0 / math.sqrt(D)
    out_dtype = queries.dtype
    w_dtype = queries.dtype

    # --- tiling ---------------------------------------------------------
    TQ = _pick_q_tile(Q)
    itemsize = jnp.dtype(queries.dtype).itemsize
    # double-buffered per-batch-element footprint of all pipelined blocks
    per_elem = 2 * itemsize * (TQ * D + K * D + K * V + TQ * V
                               + (TQ * K if return_weights else 0)
                               + (TQ * K if use_mask else 0))
    TB = _pick_batch_tile(B, per_elem, 16 * 1024 * 1024)
    grid = (B // TB, Q // TQ)

    per_step_bytes = TB * per_elem
    vmem_limit = int(min(max(2 * per_step_bytes, 16 * 1024 * 1024),
                         48 * 1024 * 1024))

    # --- mask (precomputed, tiny; applied vectorized in-kernel) ---------
    mask = None
    mask_spec = None
    if use_mask:
        valid_lens = jnp.asarray(valid_lens).astype(jnp.int32)
        key_pos = jnp.arange(K, dtype=jnp.int32)
        if valid_lens.ndim == 1:
            assert valid_lens.shape == (B,)
            mask = (key_pos[None, :] < valid_lens[:, None]).astype(jnp.int32)
            mask = mask.reshape(B, 1, K)
            mask_spec = pl.BlockSpec((TB, 1, K), lambda bi, qi: (bi, 0, 0))
        else:
            assert valid_lens.shape == (B, Q)
            mask = (key_pos[None, None, :]
                    < valid_lens[:, :, None]).astype(jnp.int32)
            mask_spec = pl.BlockSpec((TB, TQ, K), lambda bi, qi: (bi, qi, 0))

    # --- kernel ---------------------------------------------------------
    def kernel(q_ref, k_ref, v_ref, *rest):
        if use_mask:
            mask_ref = rest[0]
            out_refs = rest[1:]
        else:
            out_refs = rest
        o_ref = out_refs[0]

        q = q_ref[...]          # (TB, TQ, D)
        k = k_ref[...]          # (TB, K, D)
        v = v_ref[...]          # (TB, K, V)

        # Q @ K^T without an explicit transpose: contract the trailing D dims,
        # batched over the leading TB dim (MXU-direct, no XLU transpose).
        scores = lax.dot_general(
            q, k, dimension_numbers=(((2,), (2,)), ((0,), (0,))),
            preferred_element_type=jnp.float32) * scale        # (TB, TQ, K)

        if use_mask:
            keep = mask_ref[...] != 0                          # (TB,1|TQ,K)
            keep = jnp.broadcast_to(keep, scores.shape)
            scores = jnp.where(keep, scores, jnp.float32(-1000000.0))

        # softmax over the key axis (max-subtraction; reciprocal on the EUP)
        m = jnp.max(scores, axis=-1, keepdims=True)
        e = jnp.exp(scores - m)
        s = jnp.sum(e, axis=-1, keepdims=True)
        w = e * pl.reciprocal(s, approx=True)                  # (TB, TQ, K)

        if return_weights:
            out_refs[1][...] = w.astype(w_dtype)

        # weights @ V, batched, f32 accumulation.
        o = lax.dot_general(
            w.astype(v.dtype), v,
            dimension_numbers=(((2,), (1,)), ((0,), (0,))),
            preferred_element_type=jnp.float32)                # (TB, TQ, V)
        o_ref[...] = o.astype(out_dtype)

    # --- specs ----------------------------------------------------------
    q_spec = pl.BlockSpec((TB, TQ, D), lambda bi, qi: (bi, qi, 0))
    k_spec = pl.BlockSpec((TB, K, D), lambda bi, qi: (bi, 0, 0))
    v_spec = pl.BlockSpec((TB, K, V), lambda bi, qi: (bi, 0, 0))
    o_spec = pl.BlockSpec((TB, TQ, V), lambda bi, qi: (bi, qi, 0))
    w_spec = pl.BlockSpec((TB, TQ, K), lambda bi, qi: (bi, qi, 0))

    in_specs = [q_spec, k_spec, v_spec]
    inputs = [queries, keys, values]
    if use_mask:
        in_specs.append(mask_spec)
        inputs.append(mask)

    if return_weights:
        out_specs = [o_spec, w_spec]
        out_shape = (jax.ShapeDtypeStruct((B, Q, V), out_dtype),
                     jax.ShapeDtypeStruct((B, Q, K), w_dtype))
    else:
        out_specs = [o_spec]
        out_shape = (jax.ShapeDtypeStruct((B, Q, V), out_dtype),)

    grid_spec = pltpu.PrefetchScalarGridSpec(
        num_scalar_prefetch=0,
        grid=grid,
        in_specs=in_specs,
        out_specs=out_specs,
    )

    results = pl.pallas_call(
        kernel,
        grid_spec=grid_spec,
        out_shape=out_shape,
        compiler_params=pltpu.CompilerParams(
            dimension_semantics=("parallel", "parallel"),
            vmem_limit_bytes=vmem_limit),
    )(*inputs)

    if return_weights:
        return results[0], results[1]
    return results[0]


def _reference(queries, keys, values, valid_lens):
    """Pure-JAX reference mirroring the PyTorch module."""
    d = queries.shape[-1]
    scores = jnp.einsum("bqd,bkd->bqk", queries, keys) / math.sqrt(d)
    if valid_lens is not None:
        key_idx = jnp.arange(scores.shape[-1])
        if valid_lens.ndim == 1:
            m = key_idx[None, None, :] < valid_lens[:, None, None]
        else:
            m = key_idx[None, None, :] < valid_lens[:, :, None]
        scores = jnp.where(m, scores, -1000000.0)
    w = jax.nn.softmax(scores, axis=-1)
    return jnp.einsum("bqk,bkv->bqv", w, values), w


if __name__ == "__main__":
    # Small shapes consistent with the module: batch=2, q_len=8, kv_len=8,
    # query/key dim=32, value dim=32.
    B, Q, K, D, V = 2, 8, 8, 32, 32
    key = jax.random.PRNGKey(0)
    kq, kk, kv = jax.random.split(key, 3)
    queries = jax.random.normal(kq, (B, Q, D), dtype=jnp.float32)
    keys = jax.random.normal(kk, (B, K, D), dtype=jnp.float32)
    values = jax.random.normal(kv, (B, K, V), dtype=jnp.float32)
    valid_lens = jnp.array([5, 8], dtype=jnp.int32)

    # Tolerance is 2e-3 because the softmax denominator uses the EUP
    # approximate reciprocal (pl.reciprocal(approx=True)).
    TOL = dict(atol=2e-3, rtol=2e-3)

    # 1-D per-batch valid_lens (with attention weights).
    out, attn_w = dot_product_attention(queries, keys, values, valid_lens)
    out = jax.block_until_ready(out)
    attn_w = jax.block_until_ready(attn_w)
    ref_out, ref_w = _reference(queries, keys, values, valid_lens)
    assert jnp.allclose(out, ref_out, **TOL)
    assert jnp.allclose(attn_w, ref_w, **TOL)

    # valid_lens=None path, output-only (no attention-weights HBM writeback).
    out2 = dot_product_attention(queries, keys, values, None,
                                 return_weights=False)
    out2 = jax.block_until_ready(out2)
    ref_out2, _ = _reference(queries, keys, values, None)
    assert jnp.allclose(out2, ref_out2, **TOL)

    # 2-D per-query valid_lens.
    vl2d = jnp.tile(valid_lens[:, None], (1, Q))
    out3, attn_w3 = dot_product_attention(queries, keys, values, vl2d)
    out3 = jax.block_until_ready(out3)
    ref_out3, ref_w3 = _reference(queries, keys, values, vl2d)
    assert jnp.allclose(out3, ref_out3, **TOL)
    assert jnp.allclose(attn_w3, ref_w3, **TOL)

    print("KERNEL_OK")
</pallas_src>

<mosaic_0001>
module attributes {stable_mosaic.version = 11 : i64} {
  func.func @kernel(%arg0: i32, %arg1: i32, %arg2: memref<2x8x32xf32, #tpu.memory_space<vmem>>, %arg3: memref<2x8x32xf32, #tpu.memory_space<vmem>>, %arg4: memref<2x8x32xf32, #tpu.memory_space<vmem>>, %arg5: memref<2x1x8xi32, #tpu.memory_space<vmem>>, %arg6: memref<2x8x32xf32, #tpu.memory_space<vmem>>, %arg7: memref<2x8x8xf32, #tpu.memory_space<vmem>>) attributes {dimension_semantics = [#tpu.dimension_semantics<parallel>, #tpu.dimension_semantics<parallel>], iteration_bounds = array<i64: 1, 1>, scalar_prefetch = 0 : i64, scratch_operands = 0 : i64, tpu.core_type = #tpu.core_type<tc>, window_params = [{transform_indices = @transform_0, window_bounds = array<i64: 2, 8, 32>}, {transform_indices = @transform_1, window_bounds = array<i64: 2, 8, 32>}, {transform_indices = @transform_2, window_bounds = array<i64: 2, 8, 32>}, {transform_indices = @transform_3, window_bounds = array<i64: 2, 1, 8>}, {transform_indices = @transform_4, window_bounds = array<i64: 2, 8, 32>}, {transform_indices = @transform_5, window_bounds = array<i64: 2, 8, 8>}]} {
    %c0 = arith.constant 0 : index
    %c0_0 = arith.constant 0 : index
    %c0_1 = arith.constant 0 : index
    %0 = vector.load %arg2[%c0, %c0_0, %c0_1] : memref<2x8x32xf32, #tpu.memory_space<vmem>>, vector<2x8x32xf32>
    %c0_2 = arith.constant 0 : index
    %c0_3 = arith.constant 0 : index
    %c0_4 = arith.constant 0 : index
    %1 = vector.load %arg3[%c0_2, %c0_3, %c0_4] : memref<2x8x32xf32, #tpu.memory_space<vmem>>, vector<2x8x32xf32>
    %c0_5 = arith.constant 0 : index
    %c0_6 = arith.constant 0 : index
    %c0_7 = arith.constant 0 : index
    %2 = vector.load %arg4[%c0_5, %c0_6, %c0_7] : memref<2x8x32xf32, #tpu.memory_space<vmem>>, vector<2x8x32xf32>
    %cst = arith.constant dense<0.000000e+00> : vector<2x8x8xf32>
    %3 = tpu.matmul %0, %1, %cst {dimension_numbers = #tpu.dot_dimension_numbers<[2], [2], [1], [1], [0, 0, 0, 1, 1, 1], [0], [0]>} : vector<2x8x32xf32>, vector<2x8x32xf32>, vector<2x8x8xf32> -> vector<2x8x8xf32>
    %cst_8 = arith.constant 0.176776692 : f32
    %4 = vector.broadcast %cst_8 : f32 to vector<2x8x8xf32>
    %5 = arith.mulf %3, %4 : vector<2x8x8xf32>
    %c0_9 = arith.constant 0 : index
    %c0_10 = arith.constant 0 : index
    %c0_11 = arith.constant 0 : index
    %6 = vector.load %arg5[%c0_9, %c0_10, %c0_11] : memref<2x1x8xi32, #tpu.memory_space<vmem>>, vector<2x1x8xi32>
    %c0_i32 = arith.constant 0 : i32
    %7 = vector.broadcast %c0_i32 : i32 to vector<2x1x8xi32>
    %8 = arith.cmpi ne, %6, %7 : vector<2x1x8xi32>
    %9 = vector.shape_cast %8 : vector<2x1x8xi1> to vector<2x1x8xi1>
    %10 = vector.broadcast %9 : vector<2x1x8xi1> to vector<2x8x8xi1>
    %cst_12 = arith.constant -1.000000e+06 : f32
    %11 = vector.broadcast %cst_12 : f32 to vector<2x8x8xf32>
    %12 = arith.select %10, %5, %11 : vector<2x8x8xi1>, vector<2x8x8xf32>
    %cst_13 = arith.constant dense<0xFF800000> : vector<2x8xf32>
    %13 = vector.multi_reduction <maximumf>, %12, %cst_13 [2] : vector<2x8x8xf32> to vector<2x8xf32>
    %14 = vector.shape_cast %13 : vector<2x8xf32> to vector<2x8x1xf32>
    %15 = vector.broadcast %14 : vector<2x8x1xf32> to vector<2x8x8xf32>
    %16 = arith.subf %12, %15 : vector<2x8x8xf32>
    %17 = math.exp %16 : vector<2x8x8xf32>
    %cst_14 = arith.constant dense<0.000000e+00> : vector<2x8xf32>
    %18 = vector.multi_reduction <add>, %17, %cst_14 [2] : vector<2x8x8xf32> to vector<2x8xf32>
    %19 = vector.shape_cast %18 : vector<2x8xf32> to vector<2x8x1xf32>
    %20 = tpu.reciprocal %19 {approx = true} : vector<2x8x1xf32> -> vector<2x8x1xf32>
    %21 = vector.broadcast %20 : vector<2x8x1xf32> to vector<2x8x8xf32>
    %22 = arith.mulf %17, %21 : vector<2x8x8xf32>
    %c0_15 = arith.constant 0 : index
    %c0_16 = arith.constant 0 : index
    %c0_17 = arith.constant 0 : index
    %23 = vector.load %arg7[%c0_15, %c0_16, %c0_17] : memref<2x8x8xf32, #tpu.memory_space<vmem>>, vector<2x8x8xf32>
    tpu.vector_store %arg7[%c0_15, %c0_16, %c0_17], %22 {strides = array<i32>} : memref<2x8x8xf32, #tpu.memory_space<vmem>>, vector<2x8x8xf32>,
    %cst_18 = arith.constant dense<0.000000e+00> : vector<2x8x32xf32>
    %24 = tpu.matmul %22, %2, %cst_18 {dimension_numbers = #tpu.dot_dimension_numbers<[2], [1], [1], [2], [0, 0, 0, 1, 1, 2], [0], [0]>} : vector<2x8x8xf32>, vector<2x8x32xf32>, vector<2x8x32xf32> -> vector<2x8x32xf32>
    %c0_19 = arith.constant 0 : index
    %c0_20 = arith.constant 0 : index
    %c0_21 = arith.constant 0 : index
    %25 = vector.load %arg6[%c0_19, %c0_20, %c0_21] : memref<2x8x32xf32, #tpu.memory_space<vmem>>, vector<2x8x32xf32>
    tpu.vector_store %arg6[%c0_19, %c0_20, %c0_21], %24 {strides = array<i32>} : memref<2x8x32xf32, #tpu.memory_space<vmem>>, vector<2x8x32xf32>,
    return
  }
  func.func @transform_0(%arg0: i32, %arg1: i32) -> (i32, i32, i32) {
    %c0_i32 = arith.constant 0 : i32
    %c0_i32_0 = arith.constant 0 : i32
    return %arg0, %arg1, %c0_i32 : i32, i32, i32
  }
  func.func @transform_1(%arg0: i32, %arg1: i32) -> (i32, i32, i32) {
    %c0_i32 = arith.constant 0 : i32
    %c0_i32_0 = arith.constant 0 : i32
    %c0_i32_1 = arith.constant 0 : i32
    return %arg0, %c0_i32, %c0_i32_0 : i32, i32, i32
  }
  func.func @transform_2(%arg0: i32, %arg1: i32) -> (i32, i32, i32) {
    %c0_i32 = arith.constant 0 : i32
    %c0_i32_0 = arith.constant 0 : i32
    %c0_i32_1 = arith.constant 0 : i32
    return %arg0, %c0_i32, %c0_i32_0 : i32, i32, i32
  }
  func.func @transform_3(%arg0: i32, %arg1: i32) -> (i32, i32, i32) {
    %c0_i32 = arith.constant 0 : i32
    %c0_i32_0 = arith.constant 0 : i32
    %c0_i32_1 = arith.constant 0 : i32
    return %arg0, %c0_i32, %c0_i32_0 : i32, i32, i32
  }
  func.func @transform_4(%arg0: i32, %arg1: i32) -> (i32, i32, i32) {
    %c0_i32 = arith.constant 0 : i32
    %c0_i32_0 = arith.constant 0 : i32
    return %arg0, %arg1, %c0_i32 : i32, i32, i32
  }
  func.func @transform_5(%arg0: i32, %arg1: i32) -> (i32, i32, i32) {
    %c0_i32 = arith.constant 0 : i32
    %c0_i32_0 = arith.constant 0 : i32
    return %arg0, %arg1, %c0_i32 : i32, i32, i32
  }
}

</mosaic_0001>

<bundles_post_ra>
// kernel: tpu_custom_call.1
= control target key start
LH: loop header
LB: loop body
LE: loop exit
PB: predicated region body
PF: predicated region fallthrough
CT: control target
= control target key end

     0   :  { %11 = vsyncpa [#allocation3], 0  ;;  %s764_s0 = inlined_call_operand.hbm [shape: f32[2,8,32], index: 0, kind: input, shape index: {}]   ;;  %s765_s1 = inlined_call_operand.hbm [shape: f32[2,8,32], index: 1, kind: input, shape index: {}]   ;;  %s766_s2 = inlined_call_operand.hbm [shape: f32[2,8,32], index: 2, kind: input, shape index: {}]   ;;  %s767_s3 = inlined_call_operand.vmem [shape: s32[2,1,8], index: 3, kind: input, shape index: {}]   ;;  %s768_s4 = inlined_call_operand.hbm [shape: f32[2,8,32], index: 4, kind: output, shape index: {0}]   ;;  %s769_s5 = inlined_call_operand.hbm [shape: f32[2,8,8], index: 5, kind: output, shape index: {1}]  }
   0x1   :  { %12 = vsyncpa [#allocation6], 0 }
   0x2   :  { %13 = vsyncpa [#allocation4], 0 }
   0x3   :  { %14 = vsyncpa [#allocation10], 0  ;;  %s618_s18 = smov [#allocation5]   ;;  %s619_s20 = smov [#allocation2]  }
   0x4   :  { %s32_s19 = sshll.u32 %s618_s18, 4  ;;  %s20_s21 = sshll.u32 %s619_s20, 4  ;;  %s33_s19 = int_to_ptr.vmem [resolvable:$true] %s32_s19  ;;  %s658_s21 = int_to_ptr.vmem [resolvable:$true] %s20_s21 }
   0x5   :  { %s500_s24 = scalar_lea.hbm %s765_s1, 256 }
   0x6   :  { %p501_p0 = scmp.ne.s32.totalorder %s765_s1, %s500_s24  ;;  %p504_p1 = scmp.lt.u32.totalorder %s500_s24, %s765_s1 }
   0x8   :  { %p506_p2 = pnand %p504_p1, %p501_p0 }
   0xa   :  { %509 = shalt.err (!%p506_p2)
}
   0xb   :  { %s510_s29 = scalar_lea.vmem %s33_s19, 256  ;;  %p515_p4 = scmp.lt.s32.totalorder %s33_s19, %s33_s19 }
   0xc   :  { %p511_p3 = scmp.ne.s32.totalorder %s33_s19, %s510_s29  ;;  %p516_p5 = scmp.lt.s32.totalorder %s510_s29, %s510_s29 }
   0xe   :  { %p517_p6 = por %p516_p5, %p515_p4 }
  0x10   :  { %p518_p7 = pnand %p517_p6, %p511_p3 }
  0x12   :  { %521 = shalt.err (!%p518_p7)
}
  0x13   :  { %s620_s30 = smov 128   ;;  %s621_s6 = smov 8  }
  0x14   :  { %38 = dma.hbm_to_vmem [thread:$0]  %s765_s1, 256, %s33_s19, [#allocation6], %s620_s30, %s620_s30, %s621_s6  }
  0x15   :  { %s522_s11 = scalar_lea.hbm %s764_s0, 256 }
  0x16   :  { %p523_p8 = scmp.ne.s32.totalorder %s764_s0, %s522_s11  ;;  %p526_p9 = scmp.lt.u32.totalorder %s522_s11, %s764_s0 }
  0x18   :  { %p528_p10 = pnand %p526_p9, %p523_p8 }
  0x1a   :  { %531 = shalt.err (!%p528_p10)
}
  0x1b   :  { %s532_s16 = scalar_lea.vmem %s658_s21, 256  ;;  %p537_p12 = scmp.lt.s32.totalorder %s658_s21, %s658_s21 }
  0x1c   :  { %p533_p11 = scmp.ne.s32.totalorder %s658_s21, %s532_s16  ;;  %p538_p13 = scmp.lt.s32.totalorder %s532_s16, %s532_s16 }
  0x1e   :  { %p539_p0 = por %p538_p13, %p537_p12 }
  0x20   :  { %p540_p1 = pnand %p539_p0, %p533_p11 }
  0x22   :  { %543 = shalt.err (!%p540_p1)
}
  0x23   :  { %26 = dma.hbm_to_vmem [thread:$0]  %s764_s0, 256, %s658_s21, [#allocation3], %s620_s30, %s620_s30, %s621_s6  }
  0x24   :  { %s622_s18 = smov [#allocation7]   ;;  %s544_s23 = scalar_lea.hbm %s766_s2, 256 }
  0x25   :  { %s44_s19 = sshll.u32 %s622_s18, 4  ;;  %p545_p2 = scmp.ne.s32.totalorder %s766_s2, %s544_s23  ;;  %s45_s19 = int_to_ptr.vmem [resolvable:$true] %s44_s19 }
  0x26   :  { %p548_p3 = scmp.lt.u32.totalorder %s544_s23, %s766_s2 }
  0x28   :  { %p550_p4 = pnand %p548_p3, %p545_p2 }
  0x2a   :  { %553 = shalt.err (!%p550_p4)
}
  0x2b   :  { %s554_s28 = scalar_lea.vmem %s45_s19, 256  ;;  %p559_p6 = scmp.lt.s32.totalorder %s45_s19, %s45_s19 }
  0x2c   :  { %p555_p5 = scmp.ne.s32.totalorder %s45_s19, %s554_s28  ;;  %p560_p7 = scmp.lt.s32.totalorder %s554_s28, %s554_s28 }
  0x2e   :  { %p561_p8 = por %p560_p7, %p559_p6 }
  0x30   :  { %p562_p9 = pnand %p561_p8, %p555_p5 }
  0x32   :  { %565 = shalt.err (!%p562_p9)
}
  0x33   :  { %50 = dma.hbm_to_vmem [thread:$0]  %s766_s2, 256, %s45_s19, [#allocation6], %s620_s30, %s620_s30, %s621_s6  }
  0x34   :  { %610 = dma.done.wait [#allocation3], 256  }
  0x35   :  { %611 = vsyncadd [#allocation3], 4294967040 }
  0x36   :  { %612 = dma.done.wait [#allocation6], 512  }
  0x37   :  { %613 = vsyncadd [#allocation6], 4294966784  ;;  %v623_v0 = vmov 0.0   ;;  %vm624_vm0 = vmmov 0   ;;  %vm68_vm1 = vcmask 261120   ;;  %v64_v1 = vld [vmem:[#allocation5] sm:$0xff]  ;;  %v229_v5 = vlaneseq }
  0x38   :  { %462 = vmatprep.subr.mxu0 %v623_v0  ;;  %464 = vmatprep.mubr.msk.f32.mxu0 %vm624_vm0, %v623_v0  ;;  %v65_v2 = vld [vmem:[#allocation5 + $0x8] sm:$0xff]  ;;  %v62_v3 = vld [vmem:[#allocation2] sm:$0xff]  ;;  %v63_v4 = vld [vmem:[#allocation2 + $0x8] sm:$0xff]  ;;  %v625_v10 = vmov 0   ;;  %vm241_vm5 = vcmask 64512  }
  0x39   :  { %467 = vmatprep.subr.mxu1 %v623_v0  ;;  %469 = vmatprep.mubr.msk.f32.mxu1 %vm624_vm0, %v623_v0  ;;  %v223_v6 = vld [vmem:[%s767_s3] sm:$0x1]  ;;  %v224_v7 = vld [vmem:[%s767_s3 + $0x1] sm:$0x1]  ;;  %v230_v8 = vshrl.u32 %v229_v5, 7  ;;  %v67_v36 = vld [vmem:[#allocation7 + $0x8] sm:$0xff] }
  0x3a   :  { %463 = vmatpush3.xpose.msk.msra.mxu0 %vm68_vm1, %v64_v1  ;;  %468 = vmatpush3.xpose.msk.msra.mxu1 %vm68_vm1, %v65_v2  ;;  %vm225_vm2 = vcmp.ne.s32.totalorder %v223_v6, 0  ;;  %vm226_vm3 = vcmp.ne.s32.totalorder %v224_v7, 0  ;;  %v66_v35 = vld [vmem:[#allocation7] sm:$0xff]  ;;  %s626_s3 = smov [#allocation9]  }
  0x3b   :  { %472 = vmatprep.subr.mxu0 %v623_v0  ;;  %477 = vmatprep.subr.mxu1 %v623_v0  ;;  %v231_v9 = vsub.s32 0, %v230_v8  ;;  %v227_v11 = vsel %vm225_vm2, 1, %v625_v10  ;;  %v228_v12 = vsel %vm226_vm3, 1, %v625_v10  ;;  %s431_s9 = sshll.u32 %s626_s3, 4  ;;  %s432_s9 = int_to_ptr.vmem [resolvable:$true] %s431_s9 }
  0x3c   :  { %s566_s10 = scalar_lea.vmem %s432_s9, 256  ;;  %p571_p11 = scmp.lt.s32.totalorder %s432_s9, %s432_s9 }
  0x3d   :  { %465 = vmatmul.mubr.msk.f32.vlgmr.msra.gmra.mrb[0].mxu0 %vm68_vm1, %v62_v3  ;;  %470 = vmatmul.mubr.msk.f32.vlgmr.msra.gmra.mrb[0].mxu1 %vm68_vm1, %v63_v4  ;;  %v232_v13 = vrot.slane %v227_v11, %v231_v9  ;;  %v236_v14 = vrot.slane %v228_v12, %v231_v9  ;;  %p567_p10 = scmp.ne.s32.totalorder %s432_s9, %s566_s10  ;;  %p572_p12 = scmp.lt.s32.totalorder %s566_s10, %s566_s10 }
  0x3e   :  { %474 = vmatprep.mubr.msk.f32.mxu0 %vm624_vm0, %v623_v0  ;;  %479 = vmatprep.mubr.msk.f32.mxu1 %vm624_vm0, %v623_v0 }
  0x3f   :  { %vm237_vm4 = vcmp.eq.s32.totalorder %v232_v13, 1  ;;  %vm238_vm6 = vcmp.eq.s32.totalorder %v236_v14, 1  ;;  %473 = vmatpush3.msra.mxu0 %v66_v35  ;;  %478 = vmatpush3.msra.mxu1 %v67_v36  ;;  %p573_p13 = por %p572_p12, %p571_p11 }
  0x41   :  { %p574_p0 = pnand %p573_p13, %p567_p10 }
 0x110   :  { %v141_v15 = vpop.f32.mrb[0].mxu0  ;;  %v217_v16 = vpop.f32.mrb[0].mxu1 }
 0x111   :  { %v221_v17 = vmul.f32 0.17677669, %v141_v15  ;;  %v466_v18 = vpop.f32.mrb[1].mxu0  ;;  %v222_v19 = vmul.f32 0.17677669, %v217_v16  ;;  %v471_v20 = vpop.f32.mrb[1].mxu1 }
 0x113   :  { %v239_v21 = vsel %vm237_vm4, %v221_v17, -1000000.0  ;;  %v240_v22 = vsel %vm238_vm6, %v222_v19, -1000000.0 }
 0x114   :  { %v242_v23 = vsel %vm241_vm5, %v239_v21, -inf  ;;  %v245_v24 = vsel %vm241_vm5, %v240_v22, -inf }
 0x115   :  { %243 = vmax.xlane.f32.xlu0 %v242_v23 }
 0x119   :  { %246 = vmax.xlane.f32.xlu0 %v245_v24 }
 0x1a2   :  { %v244_v25 = vpop.xlane.xlu0 %243 }
 0x1a3   :  { %v248_v26 = vsub.f32 %v239_v21, %v244_v25 }
 0x1a5   :  { %v250_v27 = vmul.f32 1.442695, %v248_v26 }
 0x1a6   :  { %v247_v28 = vpop.xlane.xlu0 %246 }
 0x1a7   :  { %492 = vpow2.f32 %v250_v27  ;;  %v249_v29 = vsub.f32 %v240_v22, %v247_v28 }
 0x1a9   :  { %v252_v30 = vmul.f32 1.442695, %v249_v29 }
 0x1ab   :  { %494 = vpow2.f32 %v252_v30 }
 0x1b1   :  { %v493_v31 = vpop.eup %492 }
 0x1b2   :  { %v254_v32 = vsel %vm241_vm5, %v493_v31, 0.0 }
 0x1b3   :  { %255 = vadd.xlane.f32.xlu1 %v254_v32 }
 0x1b5   :  { %v495_v33 = vpop.eup %494 }
 0x1b6   :  { %v257_v34 = vsel %vm241_vm5, %v495_v33, 0.0 }
 0x1b7   :  { %258 = vadd.xlane.f32.xlu1 %v257_v34 }
 0x240   :  { %v256_v37 = vpop.xlane.xlu1 %255 }
 0x241   :  { %496 = vrcp.f32 %v256_v37 }
 0x244   :  { %v259_v38 = vpop.xlane.xlu1 %258 }
 0x245   :  { %498 = vrcp.f32 %v259_v38 }
 0x24b   :  { %v497_v39 = vpop.eup %496 }
 0x24c   :  { %v262_v40 = vmul.f32 %v497_v39, %v493_v31 }
 0x24e   :  { %264 = vst.msk [vmem:[#allocation9] sm:$0xff] %vm241_vm5, %v262_v40  ;;  %475 = vmatmul.mubr.msk.f32.vlgmr.msra.gmra.mrb[2].mxu0 %vm241_vm5, %v262_v40 }
 0x24f   :  { %v499_v41 = vpop.eup %498 }
 0x250   :  { %v263_v42 = vmul.f32 %v499_v41, %v495_v33 }
 0x252   :  { %265 = vst.msk [vmem:[#allocation9 + $0x8] sm:$0xff] %vm241_vm5, %v263_v42  ;;  %480 = vmatmul.mubr.msk.f32.vlgmr.msra.gmra.mrb[2].mxu1 %vm241_vm5, %v263_v42 }
 0x253   :  { %577 = shalt.err (!%p574_p0)
}
 0x254   :  { %s578_s13 = scalar_lea.hbm %s769_s5, 256 }
 0x255   :  { %p579_p1 = scmp.ne.s32.totalorder %s769_s5, %s578_s13  ;;  %p582_p2 = scmp.lt.u32.totalorder %s578_s13, %s769_s5 }
 0x257   :  { %p584_p3 = pnand %p582_p2, %p579_p1 }
 0x259   :  { %587 = shalt.err (!%p584_p3)
}
 0x25a   :  { %437 = dma.vmem_to_hbm [thread:$0]  %s432_s9, 256, %s769_s5, [#allocation10], %s620_s30, %s620_s30, %s621_s6  }
 0x25b   :  { %s627_s19 = smov [#allocation8]  }
 0x25c   :  { %s419_s20 = sshll.u32 %s627_s19, 4  ;;  %s420_s20 = int_to_ptr.vmem [resolvable:$true] %s419_s20 }
 0x25d   :  { %s588_s22 = scalar_lea.vmem %s420_s20, 256  ;;  %p593_p5 = scmp.lt.s32.totalorder %s420_s20, %s420_s20 }
 0x25e   :  { %p589_p4 = scmp.ne.s32.totalorder %s420_s20, %s588_s22  ;;  %p594_p6 = scmp.lt.s32.totalorder %s588_s22, %s588_s22 }
 0x260   :  { %p595_p7 = por %p594_p6, %p593_p5 }
 0x262   :  { %p596_p8 = pnand %p595_p7, %p589_p4 }
 0x321   :  { %v335_v43 = vpop.f32.mrb[2].mxu0 }
 0x322   :  { %412 = vst.msk [vmem:[#allocation8] sm:$0xff] %vm68_vm1, %v335_v43  ;;  %v476_v44 = vpop.f32.mrb[3].mxu0 }
 0x325   :  { %v408_v45 = vpop.f32.mrb[2].mxu1 }
 0x326   :  { %413 = vst.msk [vmem:[#allocation8 + $0x8] sm:$0xff] %vm68_vm1, %v408_v45  ;;  %v481_v46 = vpop.f32.mrb[3].mxu1 }
 0x327   :  { %599 = shalt.err (!%p596_p8)
}
 0x328   :  { %s600_s24 = scalar_lea.hbm %s768_s4, 256 }
 0x329   :  { %p601_p9 = scmp.ne.s32.totalorder %s768_s4, %s600_s24  ;;  %p604_p10 = scmp.lt.u32.totalorder %s600_s24, %s768_s4 }
 0x32b   :  { %p606_p11 = pnand %p604_p10, %p601_p9 }
 0x32d   :  { %609 = shalt.err (!%p606_p11)
}
 0x32e   :  { %425 = dma.vmem_to_hbm [thread:$0]  %s420_s20, 256, %s768_s4, [#allocation4], %s620_s30, %s620_s30, %s621_s6  }
 0x32f   :  { %614 = dma.done.wait [#allocation4], 256  }
 0x330   :  { %615 = vsyncadd [#allocation4], 4294967040 }
 0x331   :  { %616 = dma.done.wait [#allocation10], 256  }
 0x332   :  { %617 = vsyncadd [#allocation10], 4294967040 }
 0x333   :  { %444 = vsyncpa [#allocation3], 1 }
 0x334   :  { %445 = vsyncpa [#allocation6], 1 }
 0x335   :  { %446 = vsyncpa [#allocation4], 1 }
 0x336   :  { %447 = vsyncpa [#allocation10], 1 }

</bundles_post_ra>
